<compile_context>
chip_gen: v6e
topology: v6e:2x2x1
jax: 0.10.0
libtpu: 0.0.40
codegen_flags: <defaults>
</compile_context>

<pallas_src>
from functools import partial

import jax
import jax.numpy as jnp
from jax.experimental import pallas as pl
from jax.experimental.pallas import tpu as pltpu


def _spatial_attention_kernel(w_ref, x_ref, o_ref, sum_acc, max_acc, *,
                              width, ksize, channels, acc_rows):
    """One (batch, row-tile, channel-block) grid step.

    w_ref:   (2, ksize) f32 in SMEM   -- conv weight with out-channel squeezed.
    x_ref:   (1, c_blk, tHW) VMEM     -- tHW = tile_h * width (lane-dense).
    o_ref:   (1, 1, tHW) VMEM         -- written only on the last channel step.
    sum_acc: (acc_rows, tHW) f32 VMEM -- running elementwise channel sum.
    max_acc: (acc_rows, tHW) f32 VMEM -- running elementwise channel max.
    """
    pad = ksize // 2
    c_blk = x_ref.shape[1]
    thw = x_ref.shape[2]
    k_idx = pl.program_id(2)
    nk = pl.num_programs(2)

    # ---- init the resident accumulators on the first channel step ----------
    @pl.when(k_idx == 0)
    def _():
        sum_acc[...] = jnp.zeros(sum_acc.shape, sum_acc.dtype)
        max_acc[...] = jnp.full(max_acc.shape, -jnp.inf, max_acc.dtype)

    # ---- elementwise (VPU-only) accumulation over this channel block -------
    n_full = c_blk // acc_rows
    rem = c_blk - n_full * acc_rows

    if n_full <= 16:
        # Short, fixed trip count: unroll in Python (tiny live ranges per iter).
        for i in range(n_full):
            blk = x_ref[0, i * acc_rows:(i + 1) * acc_rows, :].astype(jnp.float32)
            sum_acc[...] += blk
            max_acc[...] = jnp.maximum(max_acc[...], blk)
    else:
        # Large channel blocks: keep code size / vreg pressure bounded.
        def body(i, carry):
            c0 = pl.multiple_of(i * acc_rows, acc_rows)
            blk = x_ref[0, pl.ds(c0, acc_rows), :].astype(jnp.float32)
            sum_acc[...] += blk
            max_acc[...] = jnp.maximum(max_acc[...], blk)
            return carry
        jax.lax.fori_loop(0, n_full, body, 0, unroll=4)

    if rem:
        blk = x_ref[0, n_full * acc_rows:c_blk, :].astype(jnp.float32)
        sum_acc[0:rem, :] += blk
        max_acc[0:rem, :] = jnp.maximum(max_acc[0:rem, :], blk)

    # ---- last channel step: single XLU reduce, 1xK conv along W, sigmoid ---
    @pl.when(k_idx == nk - 1)
    def _():
        ch_sum = jnp.sum(sum_acc[...], axis=0, keepdims=True)   # (1, tHW)
        ch_max = jnp.max(max_acc[...], axis=0, keepdims=True)   # (1, tHW)
        avg = ch_sum * (1.0 / channels)
        mx = ch_max

        # Hoist the SMEM weight reads out of the tap loop.
        w_avg = [w_ref[0, k] for k in range(ksize)]
        w_max = [w_ref[1, k] for k in range(ksize)]

        # Block starts are row-aligned (tHW % width == 0), so the within-row
        # column of local flat position p is p % width.
        col = jax.lax.broadcasted_iota(jnp.int32, (1, thw), 1) % width

        # Center tap needs no shift and no mask.
        acc = w_avg[pad] * avg + w_max[pad] * mx

        # For each offset magnitude delta, roll the data AND the column indices
        # by the same amount in both circular directions.  The per-element
        # weight is selected from the *observed* column offset (rolled_col -
        # col), which (a) zeroes cross-row / zero-padding positions and
        # (b) makes the result independent of the roll sign convention.
        # Requires width >= ksize.
        for delta in range(1, pad + 1):
            for shift in (delta, thw - delta):
                r_avg = pltpu.roll(avg, shift, axis=1)
                r_mx = pltpu.roll(mx, shift, axis=1)
                r_col = pltpu.roll(col, shift, axis=1)
                off = r_col - col
                wa = jnp.where(off == delta, w_avg[pad + delta],
                               jnp.where(off == -delta, w_avg[pad - delta], 0.0))
                wm = jnp.where(off == delta, w_max[pad + delta],
                               jnp.where(off == -delta, w_max[pad - delta], 0.0))
                acc = acc + wa * r_avg + wm * r_mx

        o_ref[0] = jax.nn.sigmoid(acc).astype(o_ref.dtype)


def _default_vmem_limit():
    """Generation-aware scoped-VMEM request: ~half of physical, capped at 64 MiB
    (v5e/v6e: 64 MiB of 128 MiB physical; v7x: 32 MiB of 64 MiB physical)."""
    try:
        cap = getattr(pltpu.get_tpu_info(), "vmem_capacity_bytes", None)
    except Exception:
        cap = None
    if not cap:
        return 32 * 1024 * 1024
    return int(min(64 * 1024 * 1024, max(32 * 1024 * 1024, cap // 2)))


def _pick_tiles(N, C, H, W, itemsize, sub, vmem_limit, tile_h=None, c_blk=None):
    """Pick (tile_h, c_blk): lane-dense row tiles dividing H and channel blocks
    dividing C (multiples of the native sublane count, or C itself), maximizing
    block size within ~70% of the scoped VMEM limit and keeping >= 2 parallel
    programs when possible (v7x megacore)."""
    budget = int(vmem_limit * 0.7)
    acc_rows = min(sub, C)

    def usage(th, cb):
        thw = th * W
        return (2 * cb * thw * itemsize        # double-buffered x blocks
                + 2 * acc_rows * thw * 4       # sum / max scratch accumulators
                + 2 * thw * itemsize           # double-buffered output block
                + 10 * thw * 4)                # conv-stage temporaries (rough)

    cand_h = ([tile_h] if tile_h is not None else
              [d for d in range(1, H + 1)
               if H % d == 0 and ((d * W) % 128 == 0 or d == H)])
    cand_c = ([c_blk] if c_blk is not None else
              sorted({d for d in range(sub, C + 1)
                      if C % d == 0 and d % sub == 0} | {C}))

    best = None
    for th in cand_h:
        for cb in cand_c:
            fits = usage(th, cb) <= budget
            n_par = N * (H // th)
            size = cb * th
            score = (fits, n_par >= 2, size if fits else -size, cb if fits else -cb)
            if best is None or score > best[0]:
                best = (score, th, cb)
    return best[1], best[2]


def spatial_attention(x, conv_weight, *, tile_h=None, c_blk=None,
                      vmem_limit_bytes=None):
    """x: (N, C, H, W) float32/bfloat16.  conv_weight: (1, 2, 1, K) float."""
    N, C, H, W = x.shape
    K = conv_weight.shape[-1]
    if W < K:
        # TODO(synk): support spatial widths smaller than the conv kernel size.
        raise NotImplementedError("spatial width must be >= kernel_size")
    w2d = conv_weight.reshape(2, K).astype(jnp.float32)

    itemsize = jnp.dtype(x.dtype).itemsize
    sub = {4: 8, 2: 16, 1: 32}.get(itemsize, 8)   # native sublanes per vreg

    if vmem_limit_bytes is None:
        vmem_limit_bytes = _default_vmem_limit()

    tile_h, c_blk = _pick_tiles(N, C, H, W, itemsize, sub, vmem_limit_bytes,
                                tile_h=tile_h, c_blk=c_blk)

    if H % tile_h != 0:
        raise ValueError(f"tile_h={tile_h} must divide H={H}")
    if (tile_h * W) % 128 != 0 and tile_h != H:
        raise ValueError("tile_h * W must be a multiple of 128 (or tile_h == H)")
    if C % c_blk != 0:
        raise ValueError(f"c_blk={c_blk} must divide C={C}")
    if c_blk != C and c_blk % sub != 0:
        raise ValueError(f"c_blk={c_blk} must be a multiple of {sub} (or equal C)")

    acc_rows = min(sub, c_blk)
    thw = tile_h * W
    x_flat = x.reshape(N, C, H * W)          # lane-dense spatial layout

    out_flat = pl.pallas_call(
        partial(_spatial_attention_kernel, width=W, ksize=K, channels=C,
                acc_rows=acc_rows),
        out_shape=jax.ShapeDtypeStruct((N, 1, H * W), x.dtype),
        grid_spec=pltpu.PrefetchScalarGridSpec(
            num_scalar_prefetch=0,
            grid=(N, H // tile_h, C // c_blk),     # reduction (C) axis last
            in_specs=[
                pl.BlockSpec(memory_space=pltpu.MemorySpace.SMEM),   # conv weights
                pl.BlockSpec((1, c_blk, thw), lambda b, t, k: (b, k, t)),
            ],
            out_specs=pl.BlockSpec((1, 1, thw), lambda b, t, k: (b, 0, t)),
            scratch_shapes=[
                pltpu.VMEM((acc_rows, thw), jnp.float32),   # running channel sum
                pltpu.VMEM((acc_rows, thw), jnp.float32),   # running channel max
            ],
        ),
        compiler_params=pltpu.CompilerParams(
            dimension_semantics=("parallel", "parallel", "arbitrary"),
            vmem_limit_bytes=vmem_limit_bytes,
        ),
    )(w2d, x_flat)

    return out_flat.reshape(N, 1, H, W)


def spatial_attention_ref(x, conv_weight):
    """Pure-JAX reference of the PyTorch forward for verification."""
    K = conv_weight.shape[-1]
    pad = K // 2
    avg = jnp.mean(x, axis=1, keepdims=True)
    mx = jnp.max(x, axis=1, keepdims=True)
    cat = jnp.concatenate([avg, mx], axis=1)
    out = jax.lax.conv_general_dilated(
        cat.astype(jnp.float32), conv_weight.astype(jnp.float32),
        window_strides=(1, 1),
        padding=((0, 0), (pad, pad)),
        dimension_numbers=("NCHW", "OIHW", "NCHW"),
    )
    return jax.nn.sigmoid(out).astype(x.dtype)


if __name__ == "__main__":
    key = jax.random.PRNGKey(0)
    kw, k1, k2, k3 = jax.random.split(key, 4)

    KSIZE = 7
    conv_weight = jax.random.normal(kw, (1, 2, 1, KSIZE), dtype=jnp.float32) * 0.1

    # Config A: small CBAM-like shape, explicit row tiling -> grid (2, 2, 1),
    # exercises the 128-lane-dense block path and the single-channel-step path.
    N, C, H, W = 2, 4, 16, 16
    x = jax.random.normal(k1, (N, C, H, W), dtype=jnp.float32)
    out = jax.block_until_ready(spatial_attention(x, conv_weight, tile_h=8))
    ref = spatial_attention_ref(x, conv_weight)
    assert out.shape == (N, 1, H, W)
    assert jnp.allclose(out, ref, atol=1e-5, rtol=1e-5), "mismatch vs reference (A)"

    # Config B: channel axis split onto the grid -> grid (2, 2, 4), exercises the
    # cross-step scratch accumulation with pl.when init/finalize.
    xb = jax.random.normal(k2, (2, 32, 16, 16), dtype=jnp.float32)
    outb = jax.block_until_ready(spatial_attention(xb, conv_weight, tile_h=8, c_blk=8))
    refb = spatial_attention_ref(xb, conv_weight)
    assert jnp.allclose(outb, refb, atol=1e-4, rtol=1e-4), "mismatch vs reference (B)"

    # Config C: bf16 input, C=20 (non-multiple-of-sublane remainder chunk), N=1
    # (auto picker keeps >= 2 parallel row tiles for v7x's two TensorCores).
    xc = jax.random.normal(k3, (1, 20, 16, 16), dtype=jnp.bfloat16)
    outc = jax.block_until_ready(spatial_attention(xc, conv_weight))
    refc = spatial_attention_ref(xc, conv_weight)
    assert jnp.allclose(outc.astype(jnp.float32), refc.astype(jnp.float32),
                        atol=2e-2, rtol=2e-2), "mismatch vs reference (C)"

    print("KERNEL_OK")
</pallas_src>

<mosaic_0001>
module attributes {stable_mosaic.version = 11 : i64} {
  func.func @_spatial_attention_kernel(%arg0: i32, %arg1: i32, %arg2: i32, %arg3: memref<2x7xf32, #tpu.memory_space<smem>>, %arg4: memref<1x4x128xf32, #tpu.memory_space<vmem>>, %arg5: memref<1x1x128xf32, #tpu.memory_space<vmem>>, %arg6: memref<4x128xf32, #tpu.memory_space<vmem>>, %arg7: memref<4x128xf32, #tpu.memory_space<vmem>>) attributes {dimension_semantics = [#tpu.dimension_semantics<parallel>, #tpu.dimension_semantics<parallel>, #tpu.dimension_semantics<arbitrary>], iteration_bounds = array<i64: 2, 2, 1>, scalar_prefetch = 0 : i64, scratch_operands = 2 : i64, tpu.core_type = #tpu.core_type<tc>, window_params = [{transform_indices = @transform_0, window_bounds = array<i64: 2, 7>}, {transform_indices = @transform_1, window_bounds = array<i64: 1, 4, 128>}, {transform_indices = @transform_2, window_bounds = array<i64: 1, 1, 128>}]} {
    %c0_i32 = arith.constant 0 : i32
    %0 = arith.cmpi eq, %arg2, %c0_i32 : i32
    %1 = arith.extui %0 : i1 to i32
    %c0_i32_0 = arith.constant 0 : i32
    %2 = arith.cmpi ne, %1, %c0_i32_0 : i32
    scf.if %2 {
      %cst = arith.constant 0.000000e+00 : f32
      %14 = vector.broadcast %cst : f32 to vector<4x128xf32>
      %c0_13 = arith.constant 0 : index
      %c0_14 = arith.constant 0 : index
      %15 = vector.load %arg6[%c0_13, %c0_14] : memref<4x128xf32, #tpu.memory_space<vmem>>, vector<4x128xf32>
      tpu.vector_store %arg6[%c0_13, %c0_14], %14 {strides = array<i32>} : memref<4x128xf32, #tpu.memory_space<vmem>>, vector<4x128xf32>,
      %cst_15 = arith.constant 0xFF800000 : f32
      %16 = vector.broadcast %cst_15 : f32 to vector<4x128xf32>
      %c0_16 = arith.constant 0 : index
      %c0_17 = arith.constant 0 : index
      %17 = vector.load %arg7[%c0_16, %c0_17] : memref<4x128xf32, #tpu.memory_space<vmem>>, vector<4x128xf32>
      tpu.vector_store %arg7[%c0_16, %c0_17], %16 {strides = array<i32>} : memref<4x128xf32, #tpu.memory_space<vmem>>, vector<4x128xf32>,
    } else {
    }
    %c0 = arith.constant 0 : index
    %c0_1 = arith.constant 0 : index
    %c0_2 = arith.constant 0 : index
    %3 = vector.load %arg4[%c0, %c0_1, %c0_2] : memref<1x4x128xf32, #tpu.memory_space<vmem>>, vector<1x4x128xf32>
    %4 = vector.shape_cast %3 : vector<1x4x128xf32> to vector<4x128xf32>
    %c0_3 = arith.constant 0 : index
    %c0_4 = arith.constant 0 : index
    %5 = vector.load %arg6[%c0_3, %c0_4] : memref<4x128xf32, #tpu.memory_space<vmem>>, vector<4x128xf32>
    %6 = arith.addf %5, %4 : vector<4x128xf32>
    %c0_5 = arith.constant 0 : index
    %c0_6 = arith.constant 0 : index
    %7 = vector.load %arg6[%c0_5, %c0_6] : memref<4x128xf32, #tpu.memory_space<vmem>>, vector<4x128xf32>
    tpu.vector_store %arg6[%c0_5, %c0_6], %6 {strides = array<i32>} : memref<4x128xf32, #tpu.memory_space<vmem>>, vector<4x128xf32>,
    %c0_7 = arith.constant 0 : index
    %c0_8 = arith.constant 0 : index
    %8 = vector.load %arg7[%c0_7, %c0_8] : memref<4x128xf32, #tpu.memory_space<vmem>>, vector<4x128xf32>
    %9 = arith.maximumf %8, %4 : vector<4x128xf32>
    %c0_9 = arith.constant 0 : index
    %c0_10 = arith.constant 0 : index
    %10 = vector.load %arg7[%c0_9, %c0_10] : memref<4x128xf32, #tpu.memory_space<vmem>>, vector<4x128xf32>
    tpu.vector_store %arg7[%c0_9, %c0_10], %9 {strides = array<i32>} : memref<4x128xf32, #tpu.memory_space<vmem>>, vector<4x128xf32>,
    %c0_i32_11 = arith.constant 0 : i32
    %11 = arith.cmpi eq, %arg2, %c0_i32_11 : i32
    %12 = arith.extui %11 : i1 to i32
    %c0_i32_12 = arith.constant 0 : i32
    %13 = arith.cmpi ne, %12, %c0_i32_12 : i32
    scf.if %13 {
      %c0_13 = arith.constant 0 : index
      %c0_14 = arith.constant 0 : index
      %14 = vector.load %arg6[%c0_13, %c0_14] : memref<4x128xf32, #tpu.memory_space<vmem>>, vector<4x128xf32>
      %cst = arith.constant dense<0.000000e+00> : vector<128xf32>
      %15 = vector.multi_reduction <add>, %14, %cst [0] : vector<4x128xf32> to vector<128xf32>
      %16 = vector.shape_cast %15 : vector<128xf32> to vector<1x128xf32>
      %c0_15 = arith.constant 0 : index
      %c0_16 = arith.constant 0 : index
      %17 = vector.load %arg7[%c0_15, %c0_16] : memref<4x128xf32, #tpu.memory_space<vmem>>, vector<4x128xf32>
      %cst_17 = arith.constant dense<0xFF800000> : vector<128xf32>
      %18 = vector.multi_reduction <maximumf>, %17, %cst_17 [0] : vector<4x128xf32> to vector<128xf32>
      %19 = vector.shape_cast %18 : vector<128xf32> to vector<1x128xf32>
      %cst_18 = arith.constant 2.500000e-01 : f32
      %20 = vector.broadcast %cst_18 : f32 to vector<1x128xf32>
      %21 = arith.mulf %16, %20 : vector<1x128xf32>
      %c0_19 = arith.constant 0 : index
      %c0_20 = arith.constant 0 : index
      %22 = memref.load %arg3[%c0_19, %c0_20] : memref<2x7xf32, #tpu.memory_space<smem>>
      %c0_21 = arith.constant 0 : index
      %c1 = arith.constant 1 : index
      %23 = memref.load %arg3[%c0_21, %c1] : memref<2x7xf32, #tpu.memory_space<smem>>
      %c0_22 = arith.constant 0 : index
      %c2 = arith.constant 2 : index
      %24 = memref.load %arg3[%c0_22, %c2] : memref<2x7xf32, #tpu.memory_space<smem>>
      %c0_23 = arith.constant 0 : index
      %c3 = arith.constant 3 : index
      %25 = memref.load %arg3[%c0_23, %c3] : memref<2x7xf32, #tpu.memory_space<smem>>
      %c0_24 = arith.constant 0 : index
      %c4 = arith.constant 4 : index
      %26 = memref.load %arg3[%c0_24, %c4] : memref<2x7xf32, #tpu.memory_space<smem>>
      %c0_25 = arith.constant 0 : index
      %c5 = arith.constant 5 : index
      %27 = memref.load %arg3[%c0_25, %c5] : memref<2x7xf32, #tpu.memory_space<smem>>
      %c0_26 = arith.constant 0 : index
      %c6 = arith.constant 6 : index
      %28 = memref.load %arg3[%c0_26, %c6] : memref<2x7xf32, #tpu.memory_space<smem>>
      %c1_27 = arith.constant 1 : index
      %c0_28 = arith.constant 0 : index
      %29 = memref.load %arg3[%c1_27, %c0_28] : memref<2x7xf32, #tpu.memory_space<smem>>
      %c1_29 = arith.constant 1 : index
      %c1_30 = arith.constant 1 : index
      %30 = memref.load %arg3[%c1_29, %c1_30] : memref<2x7xf32, #tpu.memory_space<smem>>
      %c1_31 = arith.constant 1 : index
      %c2_32 = arith.constant 2 : index
      %31 = memref.load %arg3[%c1_31, %c2_32] : memref<2x7xf32, #tpu.memory_space<smem>>
      %c1_33 = arith.constant 1 : index
      %c3_34 = arith.constant 3 : index
      %32 = memref.load %arg3[%c1_33, %c3_34] : memref<2x7xf32, #tpu.memory_space<smem>>
      %c1_35 = arith.constant 1 : index
      %c4_36 = arith.constant 4 : index
      %33 = memref.load %arg3[%c1_35, %c4_36] : memref<2x7xf32, #tpu.memory_space<smem>>
      %c1_37 = arith.constant 1 : index
      %c5_38 = arith.constant 5 : index
      %34 = memref.load %arg3[%c1_37, %c5_38] : memref<2x7xf32, #tpu.memory_space<smem>>
      %c1_39 = arith.constant 1 : index
      %c6_40 = arith.constant 6 : index
      %35 = memref.load %arg3[%c1_39, %c6_40] : memref<2x7xf32, #tpu.memory_space<smem>>
      %36 = tpu.iota {dimensions = array<i32: 1>} : vector<1x128xi32>
      %c16_i32 = arith.constant 16 : i32
      %c0_i32_41 = arith.constant 0 : i32
      %37 = arith.cmpi eq, %c16_i32, %c0_i32_41 : i32
      %c1_i32 = arith.constant 1 : i32
      %38 = arith.select %37, %c1_i32, %c16_i32 : i32
      %39 = vector.broadcast %38 : i32 to vector<1x128xi32>
      %40 = arith.remsi %36, %39 : vector<1x128xi32>
      %c0_i32_42 = arith.constant 0 : i32
      %41 = vector.broadcast %c0_i32_42 : i32 to vector<1x128xi32>
      %42 = arith.cmpi ne, %40, %41 : vector<1x128xi32>
      %c0_i32_43 = arith.constant 0 : i32
      %43 = vector.broadcast %c0_i32_43 : i32 to vector<1x128xi32>
      %44 = arith.cmpi slt, %40, %43 : vector<1x128xi32>
      %c0_i32_44 = arith.constant 0 : i32
      %45 = arith.cmpi slt, %38, %c0_i32_44 : i32
      %46 = vector.broadcast %45 : i1 to vector<1x128xi1>
      %47 = vector.broadcast %46 : vector<1x128xi1> to vector<1x128xi1>
      %48 = arith.xori %44, %47 : vector<1x128xi1>
      %49 = arith.andi %48, %42 : vector<1x128xi1>
      %50 = vector.broadcast %38 : i32 to vector<1x128xi32>
      %51 = arith.addi %40, %50 : vector<1x128xi32>
      %52 = arith.select %49, %51, %40 : vector<1x128xi1>, vector<1x128xi32>
      %53 = vector.broadcast %25 : f32 to vector<1x128xf32>
      %54 = arith.mulf %53, %21 : vector<1x128xf32>
      %55 = vector.broadcast %32 : f32 to vector<1x128xf32>
      %56 = arith.mulf %55, %19 : vector<1x128xf32>
      %57 = arith.addf %54, %56 : vector<1x128xf32>
      %c1_i32_45 = arith.constant 1 : i32
      %58 = tpu.dynamic_rotate %21 by %c1_i32_45 dim 1 : vector<1x128xf32>, i32 -> vector<1x128xf32>
      %c1_i32_46 = arith.constant 1 : i32
      %59 = tpu.dynamic_rotate %19 by %c1_i32_46 dim 1 : vector<1x128xf32>, i32 -> vector<1x128xf32>
      %c1_i32_47 = arith.constant 1 : i32
      %60 = tpu.dynamic_rotate %52 by %c1_i32_47 dim 1 : vector<1x128xi32>, i32 -> vector<1x128xi32>
      %61 = arith.subi %60, %52 : vector<1x128xi32>
      %c1_i32_48 = arith.constant 1 : i32
      %62 = vector.broadcast %c1_i32_48 : i32 to vector<1x128xi32>
      %63 = arith.cmpi eq, %61, %62 : vector<1x128xi32>
      %c-1_i32 = arith.constant -1 : i32
      %64 = vector.broadcast %c-1_i32 : i32 to vector<1x128xi32>
      %65 = arith.cmpi eq, %61, %64 : vector<1x128xi32>
      %cst_49 = arith.constant 0.000000e+00 : f32
      %66 = vector.broadcast %24 : f32 to vector<1x128xf32>
      %67 = vector.broadcast %cst_49 : f32 to vector<1x128xf32>
      %68 = arith.select %65, %66, %67 : vector<1x128xi1>, vector<1x128xf32>
      %69 = vector.broadcast %26 : f32 to vector<1x128xf32>
      %70 = arith.select %63, %69, %68 : vector<1x128xi1>, vector<1x128xf32>
      %c1_i32_50 = arith.constant 1 : i32
      %71 = vector.broadcast %c1_i32_50 : i32 to vector<1x128xi32>
      %72 = arith.cmpi eq, %61, %71 : vector<1x128xi32>
      %c-1_i32_51 = arith.constant -1 : i32
      %73 = vector.broadcast %c-1_i32_51 : i32 to vector<1x128xi32>
      %74 = arith.cmpi eq, %61, %73 : vector<1x128xi32>
      %cst_52 = arith.constant 0.000000e+00 : f32
      %75 = vector.broadcast %31 : f32 to vector<1x128xf32>
      %76 = vector.broadcast %cst_52 : f32 to vector<1x128xf32>
      %77 = arith.select %74, %75, %76 : vector<1x128xi1>, vector<1x128xf32>
      %78 = vector.broadcast %33 : f32 to vector<1x128xf32>
      %79 = arith.select %72, %78, %77 : vector<1x128xi1>, vector<1x128xf32>
      %80 = arith.mulf %70, %58 : vector<1x128xf32>
      %81 = arith.addf %57, %80 : vector<1x128xf32>
      %82 = arith.mulf %79, %59 : vector<1x128xf32>
      %83 = arith.addf %81, %82 : vector<1x128xf32>
      %c127_i32 = arith.constant 127 : i32
      %84 = tpu.dynamic_rotate %21 by %c127_i32 dim 1 : vector<1x128xf32>, i32 -> vector<1x128xf32>
      %c127_i32_53 = arith.constant 127 : i32
      %85 = tpu.dynamic_rotate %19 by %c127_i32_53 dim 1 : vector<1x128xf32>, i32 -> vector<1x128xf32>
      %c127_i32_54 = arith.constant 127 : i32
      %86 = tpu.dynamic_rotate %52 by %c127_i32_54 dim 1 : vector<1x128xi32>, i32 -> vector<1x128xi32>
      %87 = arith.subi %86, %52 : vector<1x128xi32>
      %c1_i32_55 = arith.constant 1 : i32
      %88 = vector.broadcast %c1_i32_55 : i32 to vector<1x128xi32>
      %89 = arith.cmpi eq, %87, %88 : vector<1x128xi32>
      %c-1_i32_56 = arith.constant -1 : i32
      %90 = vector.broadcast %c-1_i32_56 : i32 to vector<1x128xi32>
      %91 = arith.cmpi eq, %87, %90 : vector<1x128xi32>
      %cst_57 = arith.constant 0.000000e+00 : f32
      %92 = vector.broadcast %24 : f32 to vector<1x128xf32>
      %93 = vector.broadcast %cst_57 : f32 to vector<1x128xf32>
      %94 = arith.select %91, %92, %93 : vector<1x128xi1>, vector<1x128xf32>
      %95 = vector.broadcast %26 : f32 to vector<1x128xf32>
      %96 = arith.select %89, %95, %94 : vector<1x128xi1>, vector<1x128xf32>
      %c1_i32_58 = arith.constant 1 : i32
      %97 = vector.broadcast %c1_i32_58 : i32 to vector<1x128xi32>
      %98 = arith.cmpi eq, %87, %97 : vector<1x128xi32>
      %c-1_i32_59 = arith.constant -1 : i32
      %99 = vector.broadcast %c-1_i32_59 : i32 to vector<1x128xi32>
      %100 = arith.cmpi eq, %87, %99 : vector<1x128xi32>
      %cst_60 = arith.constant 0.000000e+00 : f32
      %101 = vector.broadcast %31 : f32 to vector<1x128xf32>
      %102 = vector.broadcast %cst_60 : f32 to vector<1x128xf32>
      %103 = arith.select %100, %101, %102 : vector<1x128xi1>, vector<1x128xf32>
      %104 = vector.broadcast %33 : f32 to vector<1x128xf32>
      %105 = arith.select %98, %104, %103 : vector<1x128xi1>, vector<1x128xf32>
      %106 = arith.mulf %96, %84 : vector<1x128xf32>
      %107 = arith.addf %83, %106 : vector<1x128xf32>
      %108 = arith.mulf %105, %85 : vector<1x128xf32>
      %109 = arith.addf %107, %108 : vector<1x128xf32>
      %c2_i32 = arith.constant 2 : i32
      %110 = tpu.dynamic_rotate %21 by %c2_i32 dim 1 : vector<1x128xf32>, i32 -> vector<1x128xf32>
      %c2_i32_61 = arith.constant 2 : i32
      %111 = tpu.dynamic_rotate %19 by %c2_i32_61 dim 1 : vector<1x128xf32>, i32 -> vector<1x128xf32>
      %c2_i32_62 = arith.constant 2 : i32
      %112 = tpu.dynamic_rotate %52 by %c2_i32_62 dim 1 : vector<1x128xi32>, i32 -> vector<1x128xi32>
      %113 = arith.subi %112, %52 : vector<1x128xi32>
      %c2_i32_63 = arith.constant 2 : i32
      %114 = vector.broadcast %c2_i32_63 : i32 to vector<1x128xi32>
      %115 = arith.cmpi eq, %113, %114 : vector<1x128xi32>
      %c-2_i32 = arith.constant -2 : i32
      %116 = vector.broadcast %c-2_i32 : i32 to vector<1x128xi32>
      %117 = arith.cmpi eq, %113, %116 : vector<1x128xi32>
      %cst_64 = arith.constant 0.000000e+00 : f32
      %118 = vector.broadcast %23 : f32 to vector<1x128xf32>
      %119 = vector.broadcast %cst_64 : f32 to vector<1x128xf32>
      %120 = arith.select %117, %118, %119 : vector<1x128xi1>, vector<1x128xf32>
      %121 = vector.broadcast %27 : f32 to vector<1x128xf32>
      %122 = arith.select %115, %121, %120 : vector<1x128xi1>, vector<1x128xf32>
      %c2_i32_65 = arith.constant 2 : i32
      %123 = vector.broadcast %c2_i32_65 : i32 to vector<1x128xi32>
      %124 = arith.cmpi eq, %113, %123 : vector<1x128xi32>
      %c-2_i32_66 = arith.constant -2 : i32
      %125 = vector.broadcast %c-2_i32_66 : i32 to vector<1x128xi32>
      %126 = arith.cmpi eq, %113, %125 : vector<1x128xi32>
      %cst_67 = arith.constant 0.000000e+00 : f32
      %127 = vector.broadcast %30 : f32 to vector<1x128xf32>
      %128 = vector.broadcast %cst_67 : f32 to vector<1x128xf32>
      %129 = arith.select %126, %127, %128 : vector<1x128xi1>, vector<1x128xf32>
      %130 = vector.broadcast %34 : f32 to vector<1x128xf32>
      %131 = arith.select %124, %130, %129 : vector<1x128xi1>, vector<1x128xf32>
      %132 = arith.mulf %122, %110 : vector<1x128xf32>
      %133 = arith.addf %109, %132 : vector<1x128xf32>
      %134 = arith.mulf %131, %111 : vector<1x128xf32>
      %135 = arith.addf %133, %134 : vector<1x128xf32>
      %c126_i32 = arith.constant 126 : i32
      %136 = tpu.dynamic_rotate %21 by %c126_i32 dim 1 : vector<1x128xf32>, i32 -> vector<1x128xf32>
      %c126_i32_68 = arith.constant 126 : i32
      %137 = tpu.dynamic_rotate %19 by %c126_i32_68 dim 1 : vector<1x128xf32>, i32 -> vector<1x128xf32>
      %c126_i32_69 = arith.constant 126 : i32
      %138 = tpu.dynamic_rotate %52 by %c126_i32_69 dim 1 : vector<1x128xi32>, i32 -> vector<1x128xi32>
      %139 = arith.subi %138, %52 : vector<1x128xi32>
      %c2_i32_70 = arith.constant 2 : i32
      %140 = vector.broadcast %c2_i32_70 : i32 to vector<1x128xi32>
      %141 = arith.cmpi eq, %139, %140 : vector<1x128xi32>
      %c-2_i32_71 = arith.constant -2 : i32
      %142 = vector.broadcast %c-2_i32_71 : i32 to vector<1x128xi32>
      %143 = arith.cmpi eq, %139, %142 : vector<1x128xi32>
      %cst_72 = arith.constant 0.000000e+00 : f32
      %144 = vector.broadcast %23 : f32 to vector<1x128xf32>
      %145 = vector.broadcast %cst_72 : f32 to vector<1x128xf32>
      %146 = arith.select %143, %144, %145 : vector<1x128xi1>, vector<1x128xf32>
      %147 = vector.broadcast %27 : f32 to vector<1x128xf32>
      %148 = arith.select %141, %147, %146 : vector<1x128xi1>, vector<1x128xf32>
      %c2_i32_73 = arith.constant 2 : i32
      %149 = vector.broadcast %c2_i32_73 : i32 to vector<1x128xi32>
      %150 = arith.cmpi eq, %139, %149 : vector<1x128xi32>
      %c-2_i32_74 = arith.constant -2 : i32
      %151 = vector.broadcast %c-2_i32_74 : i32 to vector<1x128xi32>
      %152 = arith.cmpi eq, %139, %151 : vector<1x128xi32>
      %cst_75 = arith.constant 0.000000e+00 : f32
      %153 = vector.broadcast %30 : f32 to vector<1x128xf32>
      %154 = vector.broadcast %cst_75 : f32 to vector<1x128xf32>
      %155 = arith.select %152, %153, %154 : vector<1x128xi1>, vector<1x128xf32>
      %156 = vector.broadcast %34 : f32 to vector<1x128xf32>
      %157 = arith.select %150, %156, %155 : vector<1x128xi1>, vector<1x128xf32>
      %158 = arith.mulf %148, %136 : vector<1x128xf32>
      %159 = arith.addf %135, %158 : vector<1x128xf32>
      %160 = arith.mulf %157, %137 : vector<1x128xf32>
      %161 = arith.addf %159, %160 : vector<1x128xf32>
      %c3_i32 = arith.constant 3 : i32
      %162 = tpu.dynamic_rotate %21 by %c3_i32 dim 1 : vector<1x128xf32>, i32 -> vector<1x128xf32>
      %c3_i32_76 = arith.constant 3 : i32
      %163 = tpu.dynamic_rotate %19 by %c3_i32_76 dim 1 : vector<1x128xf32>, i32 -> vector<1x128xf32>
      %c3_i32_77 = arith.constant 3 : i32
      %164 = tpu.dynamic_rotate %52 by %c3_i32_77 dim 1 : vector<1x128xi32>, i32 -> vector<1x128xi32>
      %165 = arith.subi %164, %52 : vector<1x128xi32>
      %c3_i32_78 = arith.constant 3 : i32
      %166 = vector.broadcast %c3_i32_78 : i32 to vector<1x128xi32>
      %167 = arith.cmpi eq, %165, %166 : vector<1x128xi32>
      %c-3_i32 = arith.constant -3 : i32
      %168 = vector.broadcast %c-3_i32 : i32 to vector<1x128xi32>
      %169 = arith.cmpi eq, %165, %168 : vector<1x128xi32>
      %cst_79 = arith.constant 0.000000e+00 : f32
      %170 = vector.broadcast %22 : f32 to vector<1x128xf32>
      %171 = vector.broadcast %cst_79 : f32 to vector<1x128xf32>
      %172 = arith.select %169, %170, %171 : vector<1x128xi1>, vector<1x128xf32>
      %173 = vector.broadcast %28 : f32 to vector<1x128xf32>
      %174 = arith.select %167, %173, %172 : vector<1x128xi1>, vector<1x128xf32>
      %c3_i32_80 = arith.constant 3 : i32
      %175 = vector.broadcast %c3_i32_80 : i32 to vector<1x128xi32>
      %176 = arith.cmpi eq, %165, %175 : vector<1x128xi32>
      %c-3_i32_81 = arith.constant -3 : i32
      %177 = vector.broadcast %c-3_i32_81 : i32 to vector<1x128xi32>
      %178 = arith.cmpi eq, %165, %177 : vector<1x128xi32>
      %cst_82 = arith.constant 0.000000e+00 : f32
      %179 = vector.broadcast %29 : f32 to vector<1x128xf32>
      %180 = vector.broadcast %cst_82 : f32 to vector<1x128xf32>
      %181 = arith.select %178, %179, %180 : vector<1x128xi1>, vector<1x128xf32>
      %182 = vector.broadcast %35 : f32 to vector<1x128xf32>
      %183 = arith.select %176, %182, %181 : vector<1x128xi1>, vector<1x128xf32>
      %184 = arith.mulf %174, %162 : vector<1x128xf32>
      %185 = arith.addf %161, %184 : vector<1x128xf32>
      %186 = arith.mulf %183, %163 : vector<1x128xf32>
      %187 = arith.addf %185, %186 : vector<1x128xf32>
      %c125_i32 = arith.constant 125 : i32
      %188 = tpu.dynamic_rotate %21 by %c125_i32 dim 1 : vector<1x128xf32>, i32 -> vector<1x128xf32>
      %c125_i32_83 = arith.constant 125 : i32
      %189 = tpu.dynamic_rotate %19 by %c125_i32_83 dim 1 : vector<1x128xf32>, i32 -> vector<1x128xf32>
      %c125_i32_84 = arith.constant 125 : i32
      %190 = tpu.dynamic_rotate %52 by %c125_i32_84 dim 1 : vector<1x128xi32>, i32 -> vector<1x128xi32>
      %191 = arith.subi %190, %52 : vector<1x128xi32>
      %c3_i32_85 = arith.constant 3 : i32
      %192 = vector.broadcast %c3_i32_85 : i32 to vector<1x128xi32>
      %193 = arith.cmpi eq, %191, %192 : vector<1x128xi32>
      %c-3_i32_86 = arith.constant -3 : i32
      %194 = vector.broadcast %c-3_i32_86 : i32 to vector<1x128xi32>
      %195 = arith.cmpi eq, %191, %194 : vector<1x128xi32>
      %cst_87 = arith.constant 0.000000e+00 : f32
      %196 = vector.broadcast %22 : f32 to vector<1x128xf32>
      %197 = vector.broadcast %cst_87 : f32 to vector<1x128xf32>
      %198 = arith.select %195, %196, %197 : vector<1x128xi1>, vector<1x128xf32>
      %199 = vector.broadcast %28 : f32 to vector<1x128xf32>
      %200 = arith.select %193, %199, %198 : vector<1x128xi1>, vector<1x128xf32>
      %c3_i32_88 = arith.constant 3 : i32
      %201 = vector.broadcast %c3_i32_88 : i32 to vector<1x128xi32>
      %202 = arith.cmpi eq, %191, %201 : vector<1x128xi32>
      %c-3_i32_89 = arith.constant -3 : i32
      %203 = vector.broadcast %c-3_i32_89 : i32 to vector<1x128xi32>
      %204 = arith.cmpi eq, %191, %203 : vector<1x128xi32>
      %cst_90 = arith.constant 0.000000e+00 : f32
      %205 = vector.broadcast %29 : f32 to vector<1x128xf32>
      %206 = vector.broadcast %cst_90 : f32 to vector<1x128xf32>
      %207 = arith.select %204, %205, %206 : vector<1x128xi1>, vector<1x128xf32>
      %208 = vector.broadcast %35 : f32 to vector<1x128xf32>
      %209 = arith.select %202, %208, %207 : vector<1x128xi1>, vector<1x128xf32>
      %210 = arith.mulf %200, %188 : vector<1x128xf32>
      %211 = arith.addf %187, %210 : vector<1x128xf32>
      %212 = arith.mulf %209, %189 : vector<1x128xf32>
      %213 = arith.addf %211, %212 : vector<1x128xf32>
      %214 = arith.negf %213 : vector<1x128xf32>
      %215 = math.exp %214 : vector<1x128xf32>
      %cst_91 = arith.constant 1.000000e+00 : f32
      %216 = vector.broadcast %cst_91 : f32 to vector<1x128xf32>
      %217 = arith.addf %216, %215 : vector<1x128xf32>
      %218 = arith.divf %216, %217 : vector<1x128xf32>
      %c0_92 = arith.constant 0 : index
      %c0_93 = arith.constant 0 : index
      %c0_94 = arith.constant 0 : index
      %219 = vector.load %arg5[%c0_92, %c0_93, %c0_94] : memref<1x1x128xf32, #tpu.memory_space<vmem>>, vector<1x1x128xf32>
      %220 = vector.shape_cast %219 : vector<1x1x128xf32> to vector<1x128xf32>
      %221 = vector.shape_cast %218 : vector<1x128xf32> to vector<1x1x128xf32>
      tpu.vector_store %arg5[%c0_92, %c0_93, %c0_94], %221 {strides = array<i32>} : memref<1x1x128xf32, #tpu.memory_space<vmem>>, vector<1x1x128xf32>,
    } else {
    }
    return
  }
  func.func @transform_0(%arg0: i32, %arg1: i32, %arg2: i32) -> (i32, i32) {
    %c0_i32 = arith.constant 0 : i32
    %c0_i32_0 = arith.constant 0 : i32
    %c0_i32_1 = arith.constant 0 : i32
    return %c0_i32, %c0_i32_0 : i32, i32
  }
  func.func @transform_1(%arg0: i32, %arg1: i32, %arg2: i32) -> (i32, i32, i32) {
    %c0_i32 = arith.constant 0 : i32
    return %arg0, %arg2, %arg1 : i32, i32, i32
  }
  func.func @transform_2(%arg0: i32, %arg1: i32, %arg2: i32) -> (i32, i32, i32) {
    %c0_i32 = arith.constant 0 : i32
    %c0_i32_0 = arith.constant 0 : i32
    return %arg0, %c0_i32, %arg1 : i32, i32, i32
  }
}

</mosaic_0001>

<bundles_post_ra>
// kernel: tpu_custom_call.1
= control target key start
LH: loop header
LB: loop body
LE: loop exit
PB: predicated region body
PF: predicated region fallthrough
CT: control target
= control target key end

     0   :  { %s1055_s0 = inlined_call_operand.hbm [shape: f32[2,7], index: 0, kind: input, shape index: {}]   ;;  %s1056_s1 = inlined_call_operand.hbm [shape: f32[2,4,256], index: 1, kind: input, shape index: {}]   ;;  %s1057_s2 = inlined_call_operand.hbm [shape: f32[2,1,256], index: 2, kind: output, shape index: {}]  }
   0x1   :  { %1062 = sst [smem:[#allocation16_spill]] %s1055_s0 }
   0x2   :  { %7 = vsyncpa [#allocation7], 0 }
   0x3   :  { %8 = vsyncpa [#allocation5], 0 }
   0x4   :  { %10 = vsyncpa [#allocation5 + $0x1], 0 }
   0x5   :  { %11 = vsyncpa [#allocation6], 0 }
   0x6   :  { %13 = vsyncpa [#allocation6 + $0x1], 0  ;;  %s797_s9 = smov 0   ;;  %s799_s10 = smov 0  }
   0x7   :  { %s801_s11 = smov 0   ;;  %s803_s12 = smov 0  }
   0x8   :  { %s805_s13 = smov 0   ;;  %s807_s14 = smov 0  }
   0x9   :  { %s809_s15 = smov 0   ;;  %s811_s16 = smov 0  }
   0xa LB: > { %s500_s17 = sadd.s32 4294967295, %s769_s16   ;;  %s501_s18 = sadd.s32 4294967294, %s769_s16   ;;  %s769_s16 = sphi %s811_s16, %s19_s16   ;;  %s765_s15 = sphi %s809_s15, %s1086_s15   ;;  %s761_s14 = sphi %s807_s14, %s1085_s14   ;;  %s757_s13 = sphi %s805_s13, %s1084_s13   ;;  %s753_s12 = sphi %s803_s12, %s1083_s12   ;;  %s749_s11 = sphi %s801_s11, %s1082_s11   ;;  %s745_s10 = sphi %s799_s10, %s1081_s10   ;;  %s741_s9 = sphi %s797_s9, %s1080_s9  }
   0xb   : > { %p83_p0 = scmp.ne.s32.totalorder %s745_s10, %s741_s9  ;;  %p841_p1 = scmp.eq.s32.totalorder %s500_s17, 0 }
   0xc   : > { %p845_p2 = scmp.eq.s32.totalorder %s500_s17, 3  ;;  %p115_p3 = scmp.eq.s32.totalorder %s501_s18, 3 }
   0xd   : > { %p851_p4 = por %p841_p1, %p83_p0  ;;  %p502_p5 = scmp.ge.s32.totalorder %s769_s16, 1 }
   0xe   : > { %p856_p6 = por %p115_p3, %p83_p0  ;;  %p122_p7 = scmp.lt.s32.totalorder %s769_s16, 5 }
   0xf   : > { %s34_s24 = sadd.s32 1, %s761_s14  ;;  %s38_s25 = sadd.s32 1, %s765_s15 }
  0x10   : > { %s1066_s22 = scalar_select %p856_p6, 1, 0 }
  0x11   : > { %p861_p8 = pnand %p502_p5, %p122_p7  ;;  %p36_p11 = scmp.ge.s32.totalorder %s34_s24, 2 }
  0x12   : > { %1067 = sst [smem:[#allocation13_spill]] %s1066_s22  ;;  %s771_s26 = smov [#allocation4]  }
  0x13   : > { %p537_p9 = pneg %p861_p8  ;;  %s1069_s0 = sld [smem:[#allocation16_spill]] }
  0x14   : > { %s1088_s24 = smov (%p36_p11, %s34_s24), 0  ;;  %s1090_s25 = smov (!%p36_p11, %s38_s25), %s765_s15 }
  0x15   : > { %p538_p10 = pnand %p537_p9, %p841_p1  ;;  %1070 = sst [smem:[#allocation14_spill]] %s1088_s24 }
  0x16   : > { %s66_s29 = ssub.s32 %s761_s14, %s1088_s24  ;;  %s70_s30 = sadd.s32 1, %s749_s11 }
  0x17   : > { %p40_p12 = scmp.ge.s32.totalorder %s1090_s25, 2  ;;  %p77_p13 = scmp.ne.s32.totalorder %s749_s11, %s745_s10 }
  0x18   : > { %p78_p0 = scmp.eq.s32.totalorder %s769_s16, 0  ;;  %p550_p3 = scmp.lt.s32.totalorder %s769_s16, 4 }
  0x19   : > { %540 = dma.hbm_to_smem (!%p538_p10), %s1069_s0, 32, %s771_s26, [#allocation7]  }
  0x1a   : > { %s1092_s25 = smov (%p40_p12, %s1090_s25), 0  ;;  %p886_p5 = por %p78_p0, %p77_p13 }
  0x1b   : > { %1071 = sst [smem:[#allocation15_spill]] %s1092_s25  ;;  %p892_p7 = por %p845_p2, %p77_p13 }
  0x1c   : > { %s63_s5 = ssub.s32 %s765_s15, %s1092_s25  ;;  %s144_s6 = sand.u32 1, %s749_s11  }
  0x1d   : > { %s1073_s4 = scalar_select %p892_p7, 1, 0 }
  0x1e   : > { %s67_s7 = sor.u32 %s66_s29, %s63_s5  ;;  %s505_s8 = sshll.u32 %s144_s6, 2 }
  0x1f   : > { %p68_p9 = scmp.eq.s32.totalorder %s67_s7, 0  ;;  %s506_s17 = sshll.u32 %s765_s15, 1 }
  0x20   : > { %s155_s26 = sadd.s32 %s761_s14, %s506_s17  ;;  %s148_s27 = scalar_lea.vmem [#allocation8], %s505_s8 }
  0x21   : > { %s901_s18 = scalar_select %p68_p9, %s749_s11, %s70_s30  }
  0x22   : > { %s159_s28 = sshll.u32 %s148_s27, 4  ;;  %s507_s0 = sshll.u32 %s155_s26, 6  ;;  %s160_s28 = int_to_ptr.vmem [resolvable:$true] %s159_s28 }
  0x23   : > { %s157_s22 = scalar_lea.hbm %s1056_s1, %s507_s0  ;;  %p911_p2 = pnand %p550_p3, %p886_p5 }
  0x24   : > { %s145_s29 = scalar_lea.sflag [#allocation5], %s144_s6  ;;  %s654_s30 = scalar_lea.vmem %s160_s28, 64 }
  0x25   : > { %p643_p10 = pneg %p911_p2  ;;  %p655_p11 = scmp.ne.s32.totalorder %s160_s28, %s654_s30 }
  0x26   : > { %s772_s5 = smov [#allocation8]  }
  0x27   : > { %p657_p12 = pnand %p655_p11, %p643_p10  ;;  %s659_s7 = sshll.u32 %s772_s5, 4  ;;  %s660_s7 = int_to_ptr.vmem [resolvable:$false] %s659_s7 }
  0x28   : > { %s661_s8 = scalar_lea.vmem %s660_s7, 128  ;;  %p662_p0 = scmp.lt.s32.totalorder %s160_s28, %s660_s7 }
  0x29   : > { %p658_p13 = pneg %p657_p12  ;;  %p663_p9 = scmp.lt.s32.totalorder %s661_s8, %s654_s30 }
  0x2b   : > { %p664_p6 = por %p663_p9, %p662_p0 }
  0x2d   : > { %p665_p7 = pnand %p664_p6, %p658_p13 }
  0x2f   : > { %668 = shalt.err (!%p665_p7)
}
  0x30   : > { %544 = dma.hbm_to_vmem [thread:$0]  (!%p911_p2), %s157_s22, 64, %s160_s28, %s145_s29  }
  0x31   : > { %168 = sbr.rel (%p861_p8) target bundleno = 285 (0x11d), region = 28 }
  0x36   : > { %728 = dma.done.wait (%p841_p1), [#allocation7], 32  }
  0x37   : > { %730 = vsyncadd (%p841_p1), [#allocation7], 4294967264  ;;  %s926_s0 = sand.u32 1, %s745_s10  }
  0x38   : > { %s510_s24 = sshll.u32 %s926_s0, 2  ;;  %s175_s3 = scalar_lea.sflag [#allocation5], %s926_s0 }
  0x39   : > { %s178_s6 = scalar_lea.vmem [#allocation8], %s510_s24 }
  0x3a   : > { %732 = dma.done.wait (%p851_p4), %s175_s3, 64  }
  0x3b   : > { %734 = vsyncadd (%p851_p4), %s175_s3, 4294967232 }
  0x3c   : > { %183 = sfence }
  0x3d   : > { %v247_v0 = vlaneseq  ;;  %v773_v1 = vmov -inf   ;;  %v774_v3 = vmov 0.0   ;;  %s775_s19 = smov 1   ;;  %s776_s22 = smov 126   ;;  %v205_v5 = vld [vmem:[%s178_s6] sm:$0xf] }
  0x3e   : > { %204 = vst [vmem:[#allocation3] sm:$0xf] %v773_v1  ;;  %203 = vst [vmem:[#allocation2] sm:$0xf] %v774_v3  ;;  %s777_s21 = smov 127   ;;  %s778_s23 = smov 2  }
  0x3f   : > { %v248_v2 = vand.u32 127, %v247_v0  ;;  %vm216_vm0 = vcmask 1043456   ;;  %s520_s25 = sld [smem:[#allocation4 + $0x83]]  ;;  %s779_s26 = smov 3  }
  0x40   : > { %s513_s17 = sld [smem:[#allocation4 + $0x3]]  ;;  %s780_s27 = smov 125  }
  0x41   : > { %v934_v4 = vand.u32 15, %v248_v2  ;;  %s512_s28 = sld [smem:[#allocation4 + $0x2]]  ;;  %p1075_p4 = scmp.ne.s32.totalorder %s1073_s4, 0 }
  0x42   : > { %s519_s20 = sld [smem:[#allocation4 + $0x82]] }
  0x43   : > { %270 = vrot.lane.b32.xlu0 %v934_v4, %s775_s19  ;;  %329 = vrot.lane.b32.xlu1 %v934_v4, %s776_s22  ;;  %s954_s29 = sld [smem:[#allocation4 + $0x4]] }
  0x44   : > { %s957_s30 = sld [smem:[#allocation4 + $0x84]] }
  0x45   : > { %v209_v6 = vld [vmem:[#allocation3] sm:$0xf]  ;;  %v206_v8 = vld [vmem:[#allocation2] sm:$0xf]  ;;  %v263_v25 = vstv %s520_s25  ;;  %s960_s5 = sld [smem:[#allocation4 + $0x1]] }
  0x46   : > { %v210_v7 = vmax.f32 %v209_v6, %v205_v5  ;;  %v207_v9 = vadd.f32 %v206_v8, %v205_v5  ;;  %v261_v27 = vstv %s513_s17  ;;  %s963_s7 = sld [smem:[#allocation4 + $0x81]]  ;;  %s198_s17 = scalar_lea.vmem [#allocation9], %s926_s0 }
  0x47   : > { %291 = vrot.lane.b32.xlu0 %v934_v4, %s777_s21  ;;  %v275_v37 = vstv %s512_s28  ;;  %s967_s8 = sld [smem:[#allocation4 + $0x5]] }
  0x48   : > { %211 = vst [vmem:[#allocation3] sm:$0xf] %v210_v7  ;;  %208 = vst [vmem:[#allocation2] sm:$0xf] %v207_v9  ;;  %v279_v39 = vstv %s519_s20  ;;  %s970_s24 = sld [smem:[#allocation4 + $0x85]] }
  0x49   : > { %v277_v43 = vstv %s954_s29  ;;  %s975_s3 = sld [smem:[#allocation4]]  ;;  %s388_s29 = scalar_lea.sflag [#allocation6], %s926_s0 }
  0x4a   : > { %v281_v46 = vstv %s957_s30  ;;  %s978_s6 = sld [smem:[#allocation4 + $0x80]] }
  0x4b   : > { %308 = vrot.lane.b32.xlu0 %v934_v4, %s778_s23  ;;  %v313_v57 = vstv %s960_s5  ;;  %s781_s5 = smov [#allocation9]  }
  0x4c   : > { %v317_v1 = vstv %s963_s7 }
  0x4d   : > { %v315_v5 = vstv %s967_s8 }
  0x4e   : > { %v319_v9 = vstv %s970_s24 }
  0x4f   : > { %v224_v10 = vld [vmem:[#allocation3] sm:$0xf]  ;;  %v215_v12 = vld [vmem:[#allocation2] sm:$0xf] }
  0x50   : > { %v225_v11 = vsel %vm216_vm0, %v224_v10, -inf  ;;  %v217_v14 = vsel %vm216_vm0, %v215_v12, 0.0 }
  0x51   : > { %v226_v13 = vrot.slane %v225_v11, 4  ;;  %v218_v15 = vrot.slane %v217_v14, 4 }
  0x53   : > { %v227_v16 = vmax.f32 %v225_v11, %v226_v13  ;;  %v219_v17 = vadd.f32 %v218_v15, %v217_v14 }
  0x55   : > { %v228_v18 = vrot.slane %v227_v16, 2  ;;  %v220_v19 = vrot.slane %v219_v17, 2 }
  0x57   : > { %v229_v20 = vmax.f32 %v227_v16, %v228_v18  ;;  %v221_v21 = vadd.f32 %v220_v19, %v219_v17  ;;  %v351_v19 = vstv %s975_s3 }
  0x59   : > { %v230_v22 = vrot.slane %v229_v20, 1  ;;  %v222_v23 = vrot.slane %v221_v21, 1 }
  0x5b   : > { %v231_v24 = vmax.f32 %v229_v20, %v230_v22  ;;  %v223_v26 = vadd.f32 %v222_v23, %v221_v21 }
  0x5d   : > { %289 = vrot.lane.b32.xlu0 %v231_v24, %s777_s21  ;;  %268 = vrot.lane.b32.xlu1 %v231_v24, %s775_s19  ;;  %v232_v28 = vmul.f32 0.25, %v223_v26  ;;  %v264_v29 = vmul.f32 %v263_v25, %v231_v24 }
  0x5f   : > { %v262_v30 = vmul.f32 %v261_v27, %v232_v28 }
  0x61   : > { %346 = vrot.lane.b32.xlu0 %v934_v4, %s779_s26  ;;  %266 = vrot.lane.b32.xlu1 %v232_v28, %s775_s19  ;;  %v265_v31 = vadd.f32 %v264_v29, %v262_v30  ;;  %s981_s19 = sld [smem:[#allocation4 + $0x6]] }
  0x65   : > { %304 = vrot.lane.b32.xlu0 %v232_v28, %s778_s23  ;;  %287 = vrot.lane.b32.xlu1 %v232_v28, %s777_s21  ;;  %s525_s21 = sshll.u32 %s757_s13, 1  ;;  %s673_s13 = sshll.u32 %s781_s5, 4  ;;  %s674_s13 = int_to_ptr.vmem [resolvable:$false] %s673_s13 }
  0x67   : > { %v353_v26 = vstv %s981_s19 }
  0x69   : > { %327 = vrot.lane.b32.xlu0 %v231_v24, %s776_s22  ;;  %306 = vrot.lane.b32.xlu1 %v231_v24, %s778_s23  ;;  %s398_s23 = sadd.s32 %s753_s12, %s525_s21  ;;  %s675_s12 = scalar_lea.vmem %s674_s13, 32 }
  0x6a   : > { %s526_s25 = sshll.u32 %s398_s23, 4 }
  0x6b   : > { %s1008_s20 = scalar_lea.hbm %s1057_s2, %s526_s25 }
  0x6d   : > { %342 = vrot.lane.b32.xlu0 %v232_v28, %s779_s26  ;;  %325 = vrot.lane.b32.xlu1 %v232_v28, %s776_s22  ;;  %s989_s22 = sld [smem:[#allocation4 + $0x86]] }
  0x71   : > { %367 = vrot.lane.b32.xlu1 %v934_v4, %s780_s27  ;;  %363 = vrot.lane.b32.xlu0 %v232_v28, %s780_s27 }
  0x75   : > { %344 = vrot.lane.b32.xlu1 %v231_v24, %s779_s26  ;;  %s402_s26 = sshll.u32 %s198_s17, 4  ;;  %s403_s26 = int_to_ptr.vmem [resolvable:$true] %s402_s26 }
  0x76   : > { %s669_s30 = scalar_lea.vmem %s403_s26, 16  ;;  %p676_p3 = scmp.lt.s32.totalorder %s403_s26, %s674_s13 }
  0x77   : > { %p670_p1 = scmp.ne.s32.totalorder %s403_s26, %s669_s30  ;;  %p677_p5 = scmp.lt.s32.totalorder %s675_s12, %s669_s30 }
  0x79   : > { %365 = vrot.lane.b32.xlu1 %v231_v24, %s780_s27  ;;  %v355_v24 = vstv %s978_s6  ;;  %p671_p6 = pnand %p670_p1, %p1075_p4  ;;  %p678_p7 = por %p677_p5, %p676_p3 }
  0x7b   : > { %p672_p8 = pneg %p671_p6 }
  0x7d   : > { %p679_p2 = pnand %p678_p7, %p672_p8 }
  0xb5   : > { %v271_v32 = vpop.permute.xlu0 %270  ;;  %v330_v35 = vpop.permute.xlu1 %329 }
  0xb6   : > { %v272_v34 = vsub.s32 %v271_v32, %v934_v4  ;;  %v331_v53 = vsub.s32 %v330_v35, %v934_v4  ;;  %v357_v35 = vstv %s989_s22 }
  0xb8   : > { %vm274_vm1 = vcmp.eq.s32.totalorder %v272_v34, 4294967295  ;;  %vm273_vm2 = vcmp.eq.s32.totalorder %v272_v34, 1  ;;  %vm333_vm7 = vcmp.eq.s32.totalorder %v331_v53, 4294967294  ;;  %vm332_vm8 = vcmp.eq.s32.totalorder %v331_v53, 2 }
  0xb9   : > { %v292_v33 = vpop.permute.xlu0 %291  ;;  %v276_v42 = vsel %vm274_vm1, %v275_v37, 0.0  ;;  %v280_v45 = vsel %vm274_vm1, %v279_v39, 0.0  ;;  %v334_v11 = vsel %vm333_vm7, %v313_v57, 0.0  ;;  %v336_v16 = vsel %vm333_vm7, %v317_v1, 0.0 }
  0xba   : > { %v293_v38 = vsub.s32 %v292_v33, %v934_v4  ;;  %v278_v48 = vsel %vm273_vm2, %v277_v43, %v276_v42  ;;  %v282_v54 = vsel %vm273_vm2, %v281_v46, %v280_v45  ;;  %v335_v20 = vsel %vm332_vm8, %v315_v5, %v334_v11 }
  0xbb   : > { %v337_v25 = vsel %vm332_vm8, %v319_v9, %v336_v16 }
  0xbc   : > { %vm295_vm3 = vcmp.eq.s32.totalorder %v293_v38, 4294967295  ;;  %vm294_vm4 = vcmp.eq.s32.totalorder %v293_v38, 1 }
  0xbd   : > { %v309_v36 = vpop.permute.xlu0 %308  ;;  %v296_v50 = vsel %vm295_vm3, %v275_v37, 0.0  ;;  %v298_v51 = vsel %vm295_vm3, %v279_v39, 0.0 }
  0xbe   : > { %v310_v44 = vsub.s32 %v309_v36, %v934_v4  ;;  %v299_v58 = vsel %vm294_vm4, %v281_v46, %v298_v51  ;;  %v297_v60 = vsel %vm294_vm4, %v277_v43, %v296_v50 }
  0xc0   : > { %vm312_vm5 = vcmp.eq.s32.totalorder %v310_v44, 4294967294  ;;  %vm311_vm6 = vcmp.eq.s32.totalorder %v310_v44, 2 }
  0xc1   : > { %v314_v62 = vsel %vm312_vm5, %v313_v57, 0.0  ;;  %v318_v2 = vsel %vm312_vm5, %v317_v1, 0.0 }
  0xc2   : > { %v316_v8 = vsel %vm311_vm6, %v315_v5, %v314_v62  ;;  %v320_v15 = vsel %vm311_vm6, %v319_v9, %v318_v2 }
  0xcf   : > { %v290_v40 = vpop.permute.xlu0 %289  ;;  %v269_v41 = vpop.permute.xlu1 %268 }
  0xd0   : > { %v285_v55 = vmul.f32 %v282_v54, %v269_v41  ;;  %v302_v3 = vmul.f32 %v299_v58, %v290_v40 }
  0xd3   : > { %v347_v47 = vpop.permute.xlu0 %346  ;;  %v267_v49 = vpop.permute.xlu1 %266 }
  0xd4   : > { %v283_v52 = vmul.f32 %v278_v48, %v267_v49  ;;  %v348_v7 = vsub.s32 %v347_v47, %v934_v4 }
  0xd6   : > { %v284_v56 = vadd.f32 %v283_v52, %v265_v31  ;;  %vm350_vm9 = vcmp.eq.s32.totalorder %v348_v7, 4294967293  ;;  %vm349_vm10 = vcmp.eq.s32.totalorder %v348_v7, 3 }
  0xd7   : > { %v305_v59 = vpop.permute.xlu0 %304  ;;  %v288_v61 = vpop.permute.xlu1 %287  ;;  %v352_v27 = vsel %vm350_vm9, %v351_v19, 0.0  ;;  %v356_v32 = vsel %vm350_vm9, %v355_v24, 0.0 }
  0xd8   : > { %v286_v63 = vadd.f32 %v285_v55, %v284_v56  ;;  %v300_v0 = vmul.f32 %v297_v60, %v288_v61  ;;  %v321_v12 = vmul.f32 %v316_v8, %v305_v59  ;;  %v354_v36 = vsel %vm349_vm10, %v353_v26, %v352_v27 }
  0xd9   : > { %v358_v40 = vsel %vm349_vm10, %v357_v35, %v356_v32 }
  0xda   : > { %v301_v6 = vadd.f32 %v300_v0, %v286_v63 }
  0xdb   : > { %v307_v10 = vpop.permute.xlu1 %306  ;;  %v328_v14 = vpop.permute.xlu0 %327 }
  0xdc   : > { %v303_v13 = vadd.f32 %v302_v3, %v301_v6  ;;  %v323_v18 = vmul.f32 %v320_v15, %v307_v10  ;;  %v340_v28 = vmul.f32 %v337_v25, %v328_v14 }
  0xde   : > { %v322_v17 = vadd.f32 %v321_v12, %v303_v13 }
  0xdf   : > { %v326_v21 = vpop.permute.xlu1 %325  ;;  %v343_v29 = vpop.permute.xlu0 %342 }
  0xe0   : > { %v324_v22 = vadd.f32 %v323_v18, %v322_v17  ;;  %v338_v23 = vmul.f32 %v335_v20, %v326_v21  ;;  %v359_v37 = vmul.f32 %v354_v36, %v343_v29 }
  0xe2   : > { %v339_v30 = vadd.f32 %v338_v23, %v324_v22 }
  0xe3   : > { %v368_v31 = vpop.permute.xlu1 %367  ;;  %v364_v38 = vpop.permute.xlu0 %363 }
  0xe4   : > { %v341_v33 = vadd.f32 %v340_v28, %v339_v30  ;;  %v369_v34 = vsub.s32 %v368_v31, %v934_v4 }
  0xe6   : > { %vm370_vm11 = vcmp.eq.s32.totalorder %v369_v34, 3  ;;  %vm371_vm12 = vcmp.eq.s32.totalorder %v369_v34, 4294967293  ;;  %v360_v43 = vadd.f32 %v359_v37, %v341_v33 }
  0xe7   : > { %v372_v39 = vsel %vm371_vm12, %v351_v19, 0.0  ;;  %v345_v41 = vpop.permute.xlu1 %344  ;;  %v374_v42 = vsel %vm371_vm12, %v355_v24, 0.0 }
  0xe8   : > { %v361_v44 = vmul.f32 %v358_v40, %v345_v41  ;;  %v373_v45 = vsel %vm370_vm11, %v353_v26, %v372_v39  ;;  %v375_v47 = vsel %vm370_vm11, %v357_v35, %v374_v42 }
  0xe9   : > { %v376_v46 = vmul.f32 %v373_v45, %v364_v38 }
  0xea   : > { %v362_v4 = vadd.f32 %v361_v44, %v360_v43 }
  0xeb   : > { %v366_v48 = vpop.permute.xlu1 %365 }
  0xec   : > { %v377_v49 = vadd.f32 %v376_v46, %v362_v4  ;;  %v378_v50 = vmul.f32 %v375_v47, %v366_v48 }
  0xee   : > { %v379_v51 = vadd.f32 %v378_v50, %v377_v49 }
  0xf0   : > { %v524_v52 = vmul.f32 -1.442695, %v379_v51 }
  0xf2   : > { %626 = vpow2.f32 %v524_v52 }
  0xff   : > { %v627_v53 = vpop.eup %626 }
 0x100   : > { %v383_v54 = vadd.f32 1.0, %v627_v53 }
 0x102   : > { %628 = vrcp.f32 %v383_v54 }
 0x10f   : > { %v629_v55 = vpop.eup %628 }
 0x110   : > { %386 = vst [vmem:[%s198_s17] sm:$0x1] %v629_v55 }
 0x111   : > { %682 = shalt.err (!%p679_p2)
}
 0x112   : > { %s683_s7 = scalar_lea.hbm %s1008_s20, 16  ;;  %s687_s24 = scalar_lea.hbm %s1057_s2, 64 }
 0x113   : > { %p684_p10 = scmp.ne.s32.totalorder %s1008_s20, %s683_s7  ;;  %p688_p13 = scmp.lt.s32.totalorder %s1008_s20, %s1057_s2 }
 0x114   : > { %p689_p0 = scmp.lt.s32.totalorder %s687_s24, %s683_s7 }
 0x115   : > { %p685_p11 = pnand %p684_p10, %p1075_p4 }
 0x116   : > { %p690_p9 = por %p689_p0, %p688_p13 }
 0x117   : > { %p686_p12 = pneg %p685_p11 }
 0x119   : > { %p691_p1 = pnand %p690_p9, %p686_p12 }
 0x11b   : > { %694 = shalt.err (!%p691_p1)
}
 0x11c   : > { %535 = dma.vmem_to_hbm [thread:$0]  (%p1075_p4), %s403_s26, 16, %s1008_s20, %s388_s29  }
 0x11d PF: > { %s1076_s19 = sld [smem:[#allocation13_spill]]  ;;  %p552_p6 = scmp.ge.s32.totalorder %s769_s16, 2 }
 0x11e   : > { %s414_s22 = sand.u32 1, %s741_s9  }
 0x11f   : > { %s415_s21 = scalar_lea.sflag [#allocation6], %s414_s22 }
 0x123   : > { %p1077_p8 = scmp.ne.s32.totalorder %s1076_s19, 0 }
 0x125   : > { %p546_p3 = pnand %p552_p6, %p1077_p8 }
 0x127   : > { %p547_p5 = pneg %p546_p3 }
 0x129   : > { %736 = dma.done.wait (%p547_p5), %s415_s21, 16  }
 0x12a   : > { %738 = vsyncadd (%p547_p5), %s415_s21, 4294967280  ;;  %s19_s16 = sadd.s32 1, %s769_s16   ;;  %s1078_s4 = sld [smem:[#allocation14_spill]] }
 0x12b   : > { %p16_p7 = scmp.ge.s32.totalorder %s19_s16, 6   ;;  %s1079_s23 = sld [smem:[#allocation15_spill]] }
 0x12c   : > { %s1080_s9 = smov %s745_s10  ;;  %s1081_s10 = smov %s749_s11 }
 0x12d   : > { %s1082_s11 = smov %s901_s18  ;;  %s1083_s12 = smov %s761_s14 }
 0x12e   : > { %s1084_s13 = smov %s765_s15  ;;  %18 = sbr.rel (!%p16_p7) target bundleno = 10 (0xa), region = 86 }
 0x130   : > { %s1085_s14 = smov %s1078_s4 }
 0x131   : > { %s1086_s15 = smov %s1079_s23 }
 0x133   :  { %419 = vsyncpa [#allocation5], 1 }
 0x134   :  { %421 = vsyncpa [#allocation5 + $0x1], 1 }
 0x135   :  { %422 = vsyncpa [#allocation6], 1 }
 0x136   :  { %424 = vsyncpa [#allocation6 + $0x1], 1 }
 0x137   :  { %425 = vsyncpa [#allocation7], 1 }
 0x138   :  { %427 = vsyncpa [#allocation7 + $0x1], 1 }

</bundles_post_ra>
